<compile_context>
chip_gen: v5e
topology: v5e:2x2
jax: 0.10.0
libtpu: 0.0.40
codegen_flags: <defaults>
</compile_context>

<pallas_src>
import jax
import jax.numpy as jnp
from jax.experimental import pallas as pl
from jax.experimental.pallas import tpu as pltpu


def _round_up(x, m):
    return ((x + m - 1) // m) * m


# --------------------------------------------------------------------------- #
# Kernel
# --------------------------------------------------------------------------- #
def awareness_kernel(x_ref, w1_ref, b1_ref, w2_ref, b2_ref, w3_ref, b3_ref, o_ref):
    # x_ref: (bm, bundle)  w1: (bundle, H)  w2: (H, H)  w3: (H, actions)
    # biases: (1, H) / (1, actions), always f32.
    # Cast x in-kernel (VPU slot, hidden under the MXU) instead of in the
    # wrapper; a no-op when the compute dtype is f32.
    x = x_ref[...].astype(w1_ref.dtype)
    h1 = jnp.dot(x, w1_ref[...], preferred_element_type=jnp.float32) + b1_ref[...]
    h1 = jnp.maximum(h1, 0.0)
    h2 = jnp.dot(h1.astype(w2_ref.dtype), w2_ref[...],
                 preferred_element_type=jnp.float32) + b2_ref[...]
    h2 = jnp.maximum(h2, 0.0)
    out = jnp.dot(h2.astype(w3_ref.dtype), w3_ref[...],
                  preferred_element_type=jnp.float32) + b3_ref[...]
    o_ref[...] = out.astype(o_ref.dtype)


# --------------------------------------------------------------------------- #
# One-time parameter preparation (hoisted out of the per-call path)
# --------------------------------------------------------------------------- #
def prepare_params(w1, b1, w2, b2, w3, b3, compute_dtype=jnp.float32):
    """Cast weights to the compute dtype and biases to (1, out) f32 rows.

    Call ONCE at init (like building the nn.Module); the per-forward wrapper
    then dispatches a single Pallas kernel with no extra cast/pad passes.
    compute_dtype: jnp.float32 (default, exact, fine on all generations) or
    jnp.bfloat16 (halves weight HBM traffic; accumulation/bias/ReLU stay f32).
    """
    cd = compute_dtype
    _w = lambda w: jnp.asarray(w, cd)
    _b = lambda b: jnp.asarray(b, jnp.float32).reshape(1, -1)
    return (_w(w1), _b(b1), _w(w2), _b(b2), _w(w3), _b(b3))


def _pick_bm(B, bm_max=512):
    """Sublane-aligned batch tile giving an even grid (>= 2 steps) when the
    batch allows, so both v7x TensorCores get work; capped so large batches
    still get several steps per core.  No-op concern on v5e/v6e (1 TC)."""
    B8 = _round_up(max(B, 1), 8)
    if B8 <= 8:
        return 8
    return min(bm_max, _round_up(pl.cdiv(B8, 2), 8))


# --------------------------------------------------------------------------- #
# Forward wrapper
# --------------------------------------------------------------------------- #
def awareness_forward(x, params, *, bm=None):
    """x: (B, bundle) in its native dtype (no wrapper-side cast).
    params: output of prepare_params(...)."""
    w1, b1, w2, b2, w3, b3 = params
    B, bundle = x.shape
    H = w1.shape[1]
    actions = w3.shape[1]

    bm = _pick_bm(B) if bm is None else max(8, _round_up(bm, 8))
    B_pad = _round_up(B, bm)
    grid_n = B_pad // bm
    if grid_n > 1 and grid_n % 2 == 1:
        # keep the grid even so megacore splits it cleanly on v7x
        B_pad += bm
        grid_n += 1

    x_p = x if B_pad == B else jnp.pad(x, ((0, B_pad - B), (0, 0)))

    itemsize = jnp.dtype(w1.dtype).itemsize
    weight_bytes = (w1.size + w2.size + w3.size) * itemsize \
        + (b1.size + b2.size + b3.size) * 4
    cost = pl.CostEstimate(
        flops=2 * B_pad * (bundle * H + H * H + H * actions),
        transcendentals=0,
        bytes_accessed=x_p.size * jnp.dtype(x_p.dtype).itemsize
        + B_pad * actions * 4 + weight_bytes,
    )

    out = pl.pallas_call(
        awareness_kernel,
        out_shape=jax.ShapeDtypeStruct((B_pad, actions), jnp.float32),
        grid_spec=pltpu.PrefetchScalarGridSpec(
            num_scalar_prefetch=0,
            grid=(grid_n,),
            in_specs=[
                pl.BlockSpec((bm, bundle), lambda i: (i, 0)),      # x tile
                pl.BlockSpec((bundle, H), lambda i: (0, 0)),       # W1 (full)
                pl.BlockSpec((1, H), lambda i: (0, 0)),            # b1 (f32)
                pl.BlockSpec((H, H), lambda i: (0, 0)),            # W2 (full)
                pl.BlockSpec((1, H), lambda i: (0, 0)),            # b2 (f32)
                pl.BlockSpec((H, actions), lambda i: (0, 0)),      # W3 (full)
                pl.BlockSpec((1, actions), lambda i: (0, 0)),      # b3 (f32)
            ],
            out_specs=pl.BlockSpec((bm, actions), lambda i: (i, 0)),
        ),
        compiler_params=pltpu.CompilerParams(
            dimension_semantics=("parallel",),
        ),
        cost_estimate=cost,
    )(x_p, w1, b1, w2, b2, w3, b3)

    return out if B_pad == B else out[:B]


# --------------------------------------------------------------------------- #
# Init + pure-JAX reference
# --------------------------------------------------------------------------- #
def init_linear_params(key, in_features, out_features):
    """Deterministic init mirroring nn.Linear's uniform(-1/sqrt(in), 1/sqrt(in))."""
    kw, kb = jax.random.split(key)
    bound = 1.0 / jnp.sqrt(jnp.float32(in_features))
    # Stored directly in (in, out) layout, i.e. PyTorch weight transposed.
    w = jax.random.uniform(kw, (in_features, out_features), jnp.float32, -bound, bound)
    b = jax.random.uniform(kb, (1, out_features), jnp.float32, -bound, bound)
    return w, b


def reference_forward(x, w1, b1, w2, b2, w3, b3):
    h1 = jnp.maximum(jnp.dot(x, w1) + b1, 0.0)
    h2 = jnp.maximum(jnp.dot(h1, w2) + b2, 0.0)
    return jnp.dot(h2, w3) + b3


# --------------------------------------------------------------------------- #
# Self-test
# --------------------------------------------------------------------------- #
if __name__ == "__main__":
    bundle_size = 32
    hidden = 64
    action_sub_size = 8

    root = jax.random.PRNGKey(0)
    kx, k1, k2, k3, kx2 = jax.random.split(root, 5)

    w1, b1 = init_linear_params(k1, bundle_size, hidden)
    w2, b2 = init_linear_params(k2, hidden, hidden)
    w3, b3 = init_linear_params(k3, hidden, action_sub_size)

    # One-time param prep (hoisted out of the per-call path).
    params_f32 = prepare_params(w1, b1, w2, b2, w3, b3, compute_dtype=jnp.float32)
    params_bf16 = prepare_params(w1, b1, w2, b2, w3, b3, compute_dtype=jnp.bfloat16)

    # 1) f32 path, small batch (grid of 2 parallel steps).
    batch = 64
    x = jax.random.normal(kx, (batch, bundle_size), jnp.float32)
    out = jax.block_until_ready(awareness_forward(x, params_f32))
    ref = reference_forward(x, w1, b1, w2, b2, w3, b3)
    assert out.shape == (batch, action_sub_size)
    assert jnp.allclose(out, ref, atol=1e-4, rtol=1e-4), "f32 mismatch vs reference"

    # 2) bf16 weight path (HBM-traffic option), checked against the true f32
    #    reference (not a bf16 reference) with an explicit tolerance.
    out_bf = jax.block_until_ready(awareness_forward(x, params_bf16))
    assert jnp.allclose(out_bf, ref, atol=5e-2, rtol=5e-2), "bf16 mismatch vs f32 reference"

    # 3) Ragged small batch: padded to an even grid, sliced back exactly.
    xb = jax.random.normal(kx2, (17, bundle_size), jnp.float32)
    out_r = jax.block_until_ready(awareness_forward(xb, params_f32))
    ref_r = reference_forward(xb, w1, b1, w2, b2, w3, b3)
    assert out_r.shape == (17, action_sub_size)
    assert jnp.allclose(out_r, ref_r, atol=1e-4, rtol=1e-4), "ragged mismatch vs reference"

    # TODO(synk): training-side logic (Adam optimizer, grad clipping in `update`)
    # is out of scope for a forward-pass kernel.
    print("KERNEL_OK")
</pallas_src>

<mosaic_0001>
module attributes {stable_mosaic.version = 11 : i64} {
  func.func @awareness_kernel(%arg0: i32, %arg1: memref<32x32xf32, #tpu.memory_space<vmem>>, %arg2: memref<32x64xf32, #tpu.memory_space<vmem>>, %arg3: memref<1x64xf32, #tpu.memory_space<vmem>>, %arg4: memref<64x64xf32, #tpu.memory_space<vmem>>, %arg5: memref<1x64xf32, #tpu.memory_space<vmem>>, %arg6: memref<64x8xf32, #tpu.memory_space<vmem>>, %arg7: memref<1x8xf32, #tpu.memory_space<vmem>>, %arg8: memref<32x8xf32, #tpu.memory_space<vmem>>) attributes {dimension_semantics = [#tpu.dimension_semantics<parallel>], iteration_bounds = array<i64: 2>, scalar_prefetch = 0 : i64, scratch_operands = 0 : i64, tpu.core_type = #tpu.core_type<tc>, window_params = [{transform_indices = @transform_0, window_bounds = array<i64: 32, 32>}, {pipeline_mode = #tpu.pipeline_mode<synchronous>, transform_indices = @transform_1, window_bounds = array<i64: 32, 64>}, {pipeline_mode = #tpu.pipeline_mode<synchronous>, transform_indices = @transform_2, window_bounds = array<i64: 1, 64>}, {pipeline_mode = #tpu.pipeline_mode<synchronous>, transform_indices = @transform_3, window_bounds = array<i64: 64, 64>}, {pipeline_mode = #tpu.pipeline_mode<synchronous>, transform_indices = @transform_4, window_bounds = array<i64: 1, 64>}, {pipeline_mode = #tpu.pipeline_mode<synchronous>, transform_indices = @transform_5, window_bounds = array<i64: 64, 8>}, {pipeline_mode = #tpu.pipeline_mode<synchronous>, transform_indices = @transform_6, window_bounds = array<i64: 1, 8>}, {transform_indices = @transform_7, window_bounds = array<i64: 32, 8>}]} {
    %c0 = arith.constant 0 : index
    %c0_0 = arith.constant 0 : index
    %0 = vector.load %arg1[%c0, %c0_0] : memref<32x32xf32, #tpu.memory_space<vmem>>, vector<32x32xf32>
    %c0_1 = arith.constant 0 : index
    %c0_2 = arith.constant 0 : index
    %1 = vector.load %arg2[%c0_1, %c0_2] : memref<32x64xf32, #tpu.memory_space<vmem>>, vector<32x64xf32>
    %cst = arith.constant dense<0.000000e+00> : vector<32x64xf32>
    %2 = tpu.matmul %0, %1, %cst {dimension_numbers = #tpu.dot_dimension_numbers<[1], [0], [0], [1], [0, 0, 1, 1], [], []>} : vector<32x32xf32>, vector<32x64xf32>, vector<32x64xf32> -> vector<32x64xf32>
    %c0_3 = arith.constant 0 : index
    %c0_4 = arith.constant 0 : index
    %3 = vector.load %arg3[%c0_3, %c0_4] : memref<1x64xf32, #tpu.memory_space<vmem>>, vector<1x64xf32>
    %4 = vector.broadcast %3 : vector<1x64xf32> to vector<32x64xf32>
    %5 = arith.addf %2, %4 : vector<32x64xf32>
    %cst_5 = arith.constant 0.000000e+00 : f32
    %6 = vector.broadcast %cst_5 : f32 to vector<32x64xf32>
    %7 = arith.maximumf %5, %6 : vector<32x64xf32>
    %c0_6 = arith.constant 0 : index
    %c0_7 = arith.constant 0 : index
    %8 = vector.load %arg4[%c0_6, %c0_7] : memref<64x64xf32, #tpu.memory_space<vmem>>, vector<64x64xf32>
    %cst_8 = arith.constant dense<0.000000e+00> : vector<32x64xf32>
    %9 = tpu.matmul %7, %8, %cst_8 {dimension_numbers = #tpu.dot_dimension_numbers<[1], [0], [0], [1], [0, 0, 1, 1], [], []>} : vector<32x64xf32>, vector<64x64xf32>, vector<32x64xf32> -> vector<32x64xf32>
    %c0_9 = arith.constant 0 : index
    %c0_10 = arith.constant 0 : index
    %10 = vector.load %arg5[%c0_9, %c0_10] : memref<1x64xf32, #tpu.memory_space<vmem>>, vector<1x64xf32>
    %11 = vector.broadcast %10 : vector<1x64xf32> to vector<32x64xf32>
    %12 = arith.addf %9, %11 : vector<32x64xf32>
    %cst_11 = arith.constant 0.000000e+00 : f32
    %13 = vector.broadcast %cst_11 : f32 to vector<32x64xf32>
    %14 = arith.maximumf %12, %13 : vector<32x64xf32>
    %c0_12 = arith.constant 0 : index
    %c0_13 = arith.constant 0 : index
    %15 = vector.load %arg6[%c0_12, %c0_13] : memref<64x8xf32, #tpu.memory_space<vmem>>, vector<64x8xf32>
    %cst_14 = arith.constant dense<0.000000e+00> : vector<32x8xf32>
    %16 = tpu.matmul %14, %15, %cst_14 {dimension_numbers = #tpu.dot_dimension_numbers<[1], [0], [0], [1], [0, 0, 1, 1], [], []>} : vector<32x64xf32>, vector<64x8xf32>, vector<32x8xf32> -> vector<32x8xf32>
    %c0_15 = arith.constant 0 : index
    %c0_16 = arith.constant 0 : index
    %17 = vector.load %arg7[%c0_15, %c0_16] : memref<1x8xf32, #tpu.memory_space<vmem>>, vector<1x8xf32>
    %18 = vector.broadcast %17 : vector<1x8xf32> to vector<32x8xf32>
    %19 = arith.addf %16, %18 : vector<32x8xf32>
    %c0_17 = arith.constant 0 : index
    %c0_18 = arith.constant 0 : index
    %20 = vector.load %arg8[%c0_17, %c0_18] : memref<32x8xf32, #tpu.memory_space<vmem>>, vector<32x8xf32>
    tpu.vector_store %arg8[%c0_17, %c0_18], %19 {strides = array<i32>} : memref<32x8xf32, #tpu.memory_space<vmem>>, vector<32x8xf32>,
    return
  }
  func.func @transform_0(%arg0: i32) -> (i32, i32) {
    %c0_i32 = arith.constant 0 : i32
    %c0_i32_0 = arith.constant 0 : i32
    return %arg0, %c0_i32 : i32, i32
  }
  func.func @transform_1(%arg0: i32) -> (i32, i32) {
    %c0_i32 = arith.constant 0 : i32
    %c0_i32_0 = arith.constant 0 : i32
    %c0_i32_1 = arith.constant 0 : i32
    return %c0_i32, %c0_i32_0 : i32, i32
  }
  func.func @transform_2(%arg0: i32) -> (i32, i32) {
    %c0_i32 = arith.constant 0 : i32
    %c0_i32_0 = arith.constant 0 : i32
    %c0_i32_1 = arith.constant 0 : i32
    return %c0_i32, %c0_i32_0 : i32, i32
  }
  func.func @transform_3(%arg0: i32) -> (i32, i32) {
    %c0_i32 = arith.constant 0 : i32
    %c0_i32_0 = arith.constant 0 : i32
    %c0_i32_1 = arith.constant 0 : i32
    return %c0_i32, %c0_i32_0 : i32, i32
  }
  func.func @transform_4(%arg0: i32) -> (i32, i32) {
    %c0_i32 = arith.constant 0 : i32
    %c0_i32_0 = arith.constant 0 : i32
    %c0_i32_1 = arith.constant 0 : i32
    return %c0_i32, %c0_i32_0 : i32, i32
  }
  func.func @transform_5(%arg0: i32) -> (i32, i32) {
    %c0_i32 = arith.constant 0 : i32
    %c0_i32_0 = arith.constant 0 : i32
    %c0_i32_1 = arith.constant 0 : i32
    return %c0_i32, %c0_i32_0 : i32, i32
  }
  func.func @transform_6(%arg0: i32) -> (i32, i32) {
    %c0_i32 = arith.constant 0 : i32
    %c0_i32_0 = arith.constant 0 : i32
    %c0_i32_1 = arith.constant 0 : i32
    return %c0_i32, %c0_i32_0 : i32, i32
  }
  func.func @transform_7(%arg0: i32) -> (i32, i32) {
    %c0_i32 = arith.constant 0 : i32
    %c0_i32_0 = arith.constant 0 : i32
    return %arg0, %c0_i32 : i32, i32
  }
}

</mosaic_0001>

<bundles_post_ra>
// kernel: tpu_custom_call.1
= control target key start
LH: loop header
LB: loop body
LE: loop exit
PB: predicated region body
PF: predicated region fallthrough
CT: control target
= control target key end

     0   :  { %s610_s24 = smov 0   ;;  %s715_s0 = inlined_call_operand.vmem [shape: f32[64,32], index: 0, kind: input, shape index: {}]   ;;  %s716_s1 = inlined_call_operand.vmem [shape: f32[32,64], index: 1, kind: input, shape index: {}]   ;;  %s717_s2 = inlined_call_operand.vmem [shape: f32[1,64], index: 2, kind: input, shape index: {}]   ;;  %s718_s3 = inlined_call_operand.vmem [shape: f32[64,64], index: 3, kind: input, shape index: {}]   ;;  %s719_s4 = inlined_call_operand.vmem [shape: f32[1,64], index: 4, kind: input, shape index: {}]   ;;  %s720_s5 = inlined_call_operand.vmem [shape: f32[64,8], index: 5, kind: input, shape index: {}]   ;;  %s721_s6 = inlined_call_operand.vmem [shape: f32[1,8], index: 6, kind: input, shape index: {}]   ;;  %s722_s7 = inlined_call_operand.vmem [shape: f32[64,8], index: 7, kind: output, shape index: {}]  }
   0x1 LB: > { %s512_s25 = sadd.s32 4294967295, %s568_s24   ;;  %p516_p0 = scmp.ge.s32.totalorder %s568_s24, 1  ;;  %s568_s24 = sphi %s610_s24, %s17_s24  }
   0x2   : > { %p238_p1 = scmp.lt.s32.totalorder %s568_s24, 3 }
   0x4   : > { %p239_p2 = pnand %p516_p0, %p238_p1 }
   0x5   : > { %s517_s30 = sshll.u32 (!%p239_p2), %s512_s25, 2 }
   0x6   : > { %242 = sbr.rel (%p239_p2) target bundleno = 444 (0x1bc), region = 48  ;;  %p271_p3 = scmp.lt.s32.totalorder (!%p239_p2), %s517_s30, 7 }
   0xb   : > { %v289_v0 = vld [vmem:[%s716_s1 + $0x18] sm:$0xff]  ;;  %v288_v1 = vld [vmem:[%s716_s1 + $0x10] sm:$0xff]  ;;  %v287_v4 = vld [vmem:[%s716_s1 + $0x8] sm:$0xff]  ;;  %s724_s30 = smov (!%p271_p3, %s517_s30), 7  ;;  %vm294_vm0 = vcmask 261120   ;;  %vm352_vm1 = vcmask 523264  }
   0xc   : > { %319 = vmatpush.msra.mxu0 %v289_v0  ;;  %v347_v2 = vld [vmem:[%s718_s3 + $0x38] sm:$0xff]  ;;  %v346_v3 = vld [vmem:[%s718_s3 + $0x30] sm:$0xff]  ;;  %v345_v5 = vld [vmem:[%s718_s3 + $0x28] sm:$0xff]  ;;  %s518_s18 = sshll.u32 %s724_s30, 3  ;;  %vm451_vm2 = vcmask 64512  }
   0xd   : > { %373 = vmatpush.msra.mxu1 %v347_v2  ;;  %535 = vmatpush.msra.mxu3 %v347_v2  ;;  %v286_v6 = vld [vmem:[%s716_s1] sm:$0xff]  ;;  %s274_s23 = scalar_lea.vmem %s715_s0, %s518_s18  ;;  %v343_v9 = vld [vmem:[%s718_s3 + $0x18] sm:$0xff]  ;;  %v342_v13 = vld [vmem:[%s718_s3 + $0x10] sm:$0xff]  ;;  %s280_s15 = scalar_lea.vmem %s722_s7, %s518_s18 }
   0xe   : > { %320 = vmatpush.msra.mxu0 %v288_v1  ;;  %v344_v7 = vld [vmem:[%s718_s3 + $0x20] sm:$0xff]  ;;  %v283_v10 = vld [vmem:[%s274_s23 + $0x8] sm:$0xff]  ;;  %v284_v11 = vld [vmem:[%s274_s23 + $0x10] sm:$0xff] }
   0xf   : > { %374 = vmatpush.msra.mxu1 %v346_v3  ;;  %536 = vmatpush.msra.mxu3 %v346_v3  ;;  %v282_v8 = vld [vmem:[%s274_s23] sm:$0xff]  ;;  %v285_v12 = vld [vmem:[%s274_s23 + $0x18] sm:$0xff]  ;;  %v341_v14 = vld [vmem:[%s718_s3 + $0x8] sm:$0xff] }
  0x10   : > { %321 = vmatpush.msra.mxu0 %v287_v4  ;;  %v340_v15 = vld [vmem:[%s718_s3] sm:$0xff]  ;;  %v405_v17 = vld [vmem:[%s720_s5 + $0x38] sm:$0xff]  ;;  %v404_v18 = vld [vmem:[%s720_s5 + $0x30] sm:$0xff] }
  0x11   : > { %375 = vmatpush.msra.mxu1 %v345_v5  ;;  %537 = vmatpush.msra.mxu3 %v345_v5  ;;  %v559_v16 = vld [vmem:[%s717_s2] ss:$0 sm:$0xff]  ;;  %v403_v19 = vld [vmem:[%s720_s5 + $0x28] sm:$0xff]  ;;  %v401_v24 = vld [vmem:[%s720_s5 + $0x18] sm:$0xff] }
  0x12   : > { %322 = vmatpush.msra.mxu0 %v286_v6  ;;  %543 = vmatpush.msra.mxu2 %v405_v17  ;;  %v402_v22 = vld [vmem:[%s720_s5 + $0x20] sm:$0xff]  ;;  %v400_v34 = vld [vmem:[%s720_s5 + $0x10] sm:$0xff]  ;;  %v399_v35 = vld [vmem:[%s720_s5 + $0x8] sm:$0xff] }
  0x13   : > { %521 = vmatmul.msk.f32.vlgmr.msra.gmra.mxu0 %vm294_vm0, %v282_v8  ;;  %376 = vmatpush.msra.mxu1 %v344_v7  ;;  %v398_v36 = vld [vmem:[%s720_s5] sm:$0xff] }
  0x14   : > { %538 = vmatpush.msra.mxu3 %v344_v7  ;;  %544 = vmatpush.msra.mxu2 %v404_v18  ;;  %v560_v37 = vld [vmem:[%s719_s4] ss:$0 sm:$0xff] }
  0x15   : > { %377 = vmatpush.msra.mxu1 %v343_v9  ;;  %v561_v50 = vld [vmem:[%s721_s6] ss:$0 sm:$0xff] }
  0x16   : > { %539 = vmatpush.msra.mxu3 %v343_v9  ;;  %545 = vmatpush.msra.mxu2 %v403_v19 }
  0x17   : > { %378 = vmatpush.msra.mxu1 %v342_v13 }
  0x18   : > { %540 = vmatpush.msra.mxu3 %v342_v13  ;;  %546 = vmatpush.msra.mxu2 %v402_v22 }
  0x19   : > { %379 = vmatpush.msra.mxu1 %v341_v14 }
  0x1a   : > { %541 = vmatpush.msra.mxu3 %v341_v14  ;;  %547 = vmatpush.msra.mxu2 %v401_v24 }
  0x1b   : > { %522 = vmatmul.msk.f32.gmra.mxu0 %vm294_vm0, %v283_v10  ;;  %380 = vmatpush.msra.mxu1 %v340_v15 }
  0x1c   : > { %542 = vmatpush.msra.mxu3 %v340_v15  ;;  %548 = vmatpush.msra.mxu2 %v400_v34 }
  0x1d   : > { %430 = vmatpush.msrb.mxu1 %v405_v17 }
  0x1e   : > { %549 = vmatpush.msra.mxu2 %v399_v35 }
  0x1f   : > { %431 = vmatpush.msrb.mxu1 %v404_v18 }
  0x20   : > { %550 = vmatpush.msra.mxu2 %v398_v36 }
  0x21   : > { %432 = vmatpush.msrb.mxu1 %v403_v19 }
  0x23   : > { %523 = vmatmul.msk.f32.gmra.mxu0 %vm294_vm0, %v284_v11  ;;  %433 = vmatpush.msrb.mxu1 %v402_v22 }
  0x25   : > { %434 = vmatpush.msrb.mxu1 %v401_v24 }
  0x27   : > { %435 = vmatpush.msrb.mxu1 %v400_v34 }
  0x29   : > { %436 = vmatpush.msrb.mxu1 %v399_v35 }
  0x2b   : > { %524 = vmatmul.msk.f32.gmra.mxu0 %vm294_vm0, %v285_v12  ;;  %437 = vmatpush.msrb.mxu1 %v398_v36 }
  0x90   : > { %v324_v20 = vpop.f32.mrf.mxu0 }
  0x91   : > { %v325_v21 = vadd.f32 %v559_v16, %v324_v20 }
  0x93   : > { %v336_v23 = vmax.f32 %v325_v21, 0.0 }
  0x95   : > { %525 = vmatmul.msk.f32.vlgmr.msra.gmra.mxu1 %vm352_vm1, %v336_v23 }
  0x98   : > { %v327_v25 = vpop.f32.mrf.mxu0 }
  0x99   : > { %v328_v26 = vadd.f32 %v559_v16, %v327_v25 }
  0x9b   : > { %v337_v27 = vmax.f32 %v328_v26, 0.0 }
  0x9d   : > { %526 = vmatmul.msk.f32.vlgmr.msra.gmra.mxu3 %vm352_vm1, %v337_v27 }
  0xa0   : > { %v330_v28 = vpop.f32.mrf.mxu0 }
  0xa1   : > { %v331_v29 = vadd.f32 %v559_v16, %v330_v28 }
  0xa3   : > { %v338_v30 = vmax.f32 %v331_v29, 0.0 }
  0xa5   : > { %527 = vmatmul.msk.f32.gmra.mxu3 %vm352_vm1, %v338_v30 }
  0xa8   : > { %v333_v31 = vpop.f32.mrf.mxu0 }
  0xa9   : > { %v334_v32 = vadd.f32 %v559_v16, %v333_v31 }
  0xab   : > { %v339_v33 = vmax.f32 %v334_v32, 0.0 }
  0xad   : > { %528 = vmatmul.msk.f32.gmra.mxu3 %vm352_vm1, %v339_v33 }
 0x112   : > { %v382_v38 = vpop.f32.mrf.mxu1 }
 0x113   : > { %v383_v39 = vadd.f32 %v560_v37, %v382_v38 }
 0x115   : > { %v394_v40 = vmax.f32 %v383_v39, 0.0 }
 0x117   : > { %529 = vmatmul.msk.f32.vlgmr.msrb.gmra.mxu1 %vm352_vm1, %v394_v40 }
 0x120   : > { %v385_v41 = vpop.f32.mrf.mxu3 }
 0x121   : > { %v386_v42 = vadd.f32 %v560_v37, %v385_v41 }
 0x123   : > { %v395_v43 = vmax.f32 %v386_v42, 0.0 }
 0x125   : > { %530 = vmatmul.msk.f32.vlgmr.msra.gmra.mxu2 %vm352_vm1, %v395_v43 }
 0x128   : > { %v388_v44 = vpop.f32.mrf.mxu3 }
 0x129   : > { %v389_v45 = vadd.f32 %v560_v37, %v388_v44 }
 0x12b   : > { %v396_v46 = vmax.f32 %v389_v45, 0.0 }
 0x12d   : > { %531 = vmatmul.msk.f32.gmra.mxu2 %vm352_vm1, %v396_v46 }
 0x130   : > { %v391_v47 = vpop.f32.mrf.mxu3 }
 0x131   : > { %v392_v48 = vadd.f32 %v560_v37, %v391_v47 }
 0x133   : > { %v397_v49 = vmax.f32 %v392_v48, 0.0 }
 0x135   : > { %532 = vmatmul.msk.f32.gmra.mxu2 %vm352_vm1, %v397_v49 }
 0x194   : > { %v439_v51 = vpop.f32.mrf.mxu1 }
 0x195   : > { %v440_v52 = vadd.f32 %v561_v50, %v439_v51 }
 0x197   : > { %452 = vst.msk [vmem:[%s280_s15] sm:$0xff] %vm451_vm2, %v440_v52 }
 0x1a8   : > { %v442_v53 = vpop.f32.mrf.mxu2 }
 0x1a9   : > { %v443_v54 = vadd.f32 %v561_v50, %v442_v53 }
 0x1ab   : > { %453 = vst.msk [vmem:[%s280_s15 + $0x8] sm:$0xff] %vm451_vm2, %v443_v54 }
 0x1b0   : > { %v445_v55 = vpop.f32.mrf.mxu2 }
 0x1b1   : > { %v446_v56 = vadd.f32 %v561_v50, %v445_v55 }
 0x1b3   : > { %454 = vst.msk [vmem:[%s280_s15 + $0x10] sm:$0xff] %vm451_vm2, %v446_v56 }
 0x1b8   : > { %v448_v57 = vpop.f32.mrf.mxu2 }
 0x1b9   : > { %v449_v58 = vadd.f32 %v561_v50, %v448_v57 }
 0x1bb   : > { %455 = vst.msk [vmem:[%s280_s15 + $0x18] sm:$0xff] %vm451_vm2, %v449_v58 }
 0x1bc PF: > { %s17_s24 = sadd.s32 1, %s568_s24  }
 0x1bd   : > { %p14_p4 = scmp.ge.s32.totalorder %s17_s24, 4  }
 0x1bf   :  { %16 = sbr.rel (!%p14_p4) target bundleno = 1 (0x1), region = 78 }

</bundles_post_ra>
